<compile_context>
chip_gen: v7x
topology: tpu7x:2x2x1
jax: 0.10.0
libtpu: 0.0.40
codegen_flags: <defaults>
</compile_context>

<pallas_src>
import functools

import jax
import jax.numpy as jnp
from jax.experimental import pallas as pl
from jax.experimental.pallas import tpu as pltpu


def _round_up(n, m):
    return ((n + m - 1) // m) * m


def _patch_project_kernel(x_ref, w_ref, b_ref, o_ref):
    # x_ref: [TM, K_pad] bf16 flattened-patch tile
    # w_ref: [K_pad, TN] bf16 weight tile (full K resident -> no reduction axis)
    # b_ref: [1, TN]     f32 bias tile
    # o_ref: [TM, TN]    output tile (out_dtype)
    acc = jnp.dot(x_ref[...], w_ref[...], preferred_element_type=jnp.float32)
    o_ref[...] = (acc + b_ref[...]).astype(o_ref.dtype)


@functools.partial(jax.jit, static_argnames=("patch_size", "out_dtype"))
def lin_project_patches(x_nchw, weight, bias, patch_size, out_dtype=jnp.bfloat16):
    """x_nchw: [B, C, H, W]; weight: [C*P*P, D]; bias: [D] -> [B, Np, D]."""
    B, C, H, W = x_nchw.shape
    P = patch_size
    assert H % P == 0 and W % P == 0
    nh, nw = H // P, W // P
    num_patches = nh * nw
    K, D = weight.shape
    assert K == C * P * P

    M = B * num_patches
    out_itemsize = jnp.dtype(out_dtype).itemsize

    # ---- padded sizes: lane-dense output stores, full MXU N/K ----
    K_pad = _round_up(K, 128)
    D_pad = _round_up(D, 128)

    # ---- weight residency: keep the whole [K_pad, D_pad] bf16 weight in VMEM
    #      when it fits (ViT projections are a few MiB); else tile D ----
    w_vmem = 2 * K_pad * D_pad * 2                      # double-buffer-counted
    weight_resident = w_vmem <= (16 << 20)
    if weight_resident:
        TN = D_pad
    else:
        TN = 512 if D_pad % 512 == 0 else (256 if D_pad % 256 == 0 else 128)

    # ---- TM: largest of 1024/512/256 whose per-step footprint fits ----
    def vmem_footprint(tm):
        return (2 * tm * K_pad * 2          # x tile, bf16, double-buffered
                + 2 * K_pad * TN * 2        # weight tile (conservatively x2)
                + 2 * TN * 4                # bias
                + 2 * tm * TN * out_itemsize)

    vmem_budget = 28 << 20                  # headroom under v7x 32 MiB scoped default
    if M >= 256:
        TM = 256
        for cand in (1024, 512):
            if M >= cand and vmem_footprint(cand) <= vmem_budget:
                TM = cand
                break
    else:
        TM = _round_up(M, 16)               # bf16: 2 rows / sublane -> multiple of 16
    M_pad = _round_up(M, TM)

    vmem_limit = None
    fp = vmem_footprint(TM)
    if fp > (14 << 20):                     # beyond v5e's 16 MiB scoped default
        vmem_limit = min(_round_up(int(fp * 1.2), 1 << 20), 32 << 20)

    # ---- glue: cast to bf16 first, patchify (channel-major flatten), pad.
    #      allow_input_fusion on operand 0 lets XLA fuse this producer chain
    #      into the pallas_call input DMAs instead of a separate HBM pass. ----
    x_bf16 = x_nchw.astype(jnp.bfloat16)
    patches = x_bf16.reshape(B, C, nh, P, nw, P)
    patches = jnp.transpose(patches, (0, 2, 4, 1, 3, 5))    # [B, nh, nw, C, P, P]
    patches = patches.reshape(M, K)
    patches = jnp.pad(patches, ((0, M_pad - M), (0, K_pad - K)))

    w_bf16 = jnp.pad(weight.astype(jnp.bfloat16),
                     ((0, K_pad - K), (0, D_pad - D)))       # [K_pad, D_pad]
    bias2d = jnp.pad(bias.astype(jnp.float32),
                     (0, D_pad - D)).reshape(1, D_pad)       # [1, D_pad]

    cost = pl.CostEstimate(
        flops=2 * M_pad * K_pad * D_pad,
        transcendentals=0,
        bytes_accessed=((D_pad // TN) * M_pad * K_pad * 2    # x (once per D tile)
                        + K_pad * D_pad * 2                  # weight read once
                        + D_pad * 4
                        + M_pad * D_pad * out_itemsize),
    )

    if weight_resident:
        # 1-D grid over M; weight/bias block index constant -> DMA'd once.
        grid = (M_pad // TM,)
        in_specs = [
            pl.BlockSpec((TM, K_pad), lambda i: (i, 0)),
            pl.BlockSpec((K_pad, D_pad), lambda i: (0, 0)),
            pl.BlockSpec((1, D_pad), lambda i: (0, 0)),
        ]
        out_specs = pl.BlockSpec((TM, D_pad), lambda i: (i, 0))
        dim_sem = ("parallel",)
    else:
        # D tile outer, M tile inner: weight tile held across the inner sweep.
        grid = (D_pad // TN, M_pad // TM)
        in_specs = [
            pl.BlockSpec((TM, K_pad), lambda j, i: (i, 0)),
            pl.BlockSpec((K_pad, TN), lambda j, i: (0, j)),
            pl.BlockSpec((1, TN), lambda j, i: (0, j)),
        ]
        out_specs = pl.BlockSpec((TM, TN), lambda j, i: (i, j))
        dim_sem = ("arbitrary", "arbitrary")

    out = pl.pallas_call(
        _patch_project_kernel,
        out_shape=jax.ShapeDtypeStruct((M_pad, D_pad), out_dtype),
        grid=grid,
        in_specs=in_specs,
        out_specs=out_specs,
        compiler_params=pltpu.CompilerParams(
            dimension_semantics=dim_sem,
            allow_input_fusion=[True, False, False],
            vmem_limit_bytes=vmem_limit,
        ),
        cost_estimate=cost,
    )(patches, w_bf16, bias2d)

    return out[:M, :D].reshape(B, num_patches, D)


if __name__ == "__main__":
    # Small, module-consistent shapes: batch=2, channels=4, spatial=16,
    # patch=4 -> 16 patches of dim 4*4*4=64, projected to hidden=32.
    # (Exercises K->128 / D->128 padding and the resident-weight 1-D grid.)
    B, C, H, W = 2, 4, 16, 16
    P = 4
    D = 32
    K = C * P * P

    key = jax.random.PRNGKey(0)
    kx, kw, kb = jax.random.split(key, 3)
    x = jax.random.normal(kx, (B, C, H, W), dtype=jnp.float32)
    weight = jax.random.normal(kw, (K, D), dtype=jnp.float32) * 0.02
    bias = jax.random.normal(kb, (D,), dtype=jnp.float32) * 0.02

    out = lin_project_patches(x, weight, bias, patch_size=P)
    jax.block_until_ready(out)

    # Reference check in plain JAX (same patchify + matmul, f32).
    nh, nw = H // P, W // P
    ref_patches = jnp.transpose(
        x.reshape(B, C, nh, P, nw, P), (0, 2, 4, 1, 3, 5)
    ).reshape(B * nh * nw, K)
    ref = (ref_patches @ weight + bias).reshape(B, nh * nw, D)

    assert out.shape == (B, nh * nw, D)
    assert out.dtype == jnp.bfloat16
    # bf16 inputs/output with f32 accumulation -> loosened tolerance vs f32 ref.
    err = float(jnp.max(jnp.abs(out.astype(jnp.float32) - ref)))
    assert jnp.allclose(out.astype(jnp.float32), ref, atol=5e-2, rtol=5e-2), err

    print("KERNEL_OK")
</pallas_src>

<mosaic_0001>
module attributes {stable_mosaic.version = 11 : i64} {
  func.func @_patch_project_kernel(%arg0: i32, %arg1: memref<32x128xbf16, #tpu.memory_space<vmem>>, %arg2: memref<128x128xbf16, #tpu.memory_space<vmem>>, %arg3: memref<1x128xf32, #tpu.memory_space<vmem>>, %arg4: memref<32x128xbf16, #tpu.memory_space<vmem>>) attributes {dimension_semantics = [#tpu.dimension_semantics<parallel>], iteration_bounds = array<i64: 1>, scalar_prefetch = 0 : i64, scratch_operands = 0 : i64, tpu.core_type = #tpu.core_type<tc>, window_params = [{transform_indices = @transform_0, window_bounds = array<i64: 32, 128>}, {pipeline_mode = #tpu.pipeline_mode<synchronous>, transform_indices = @transform_1, window_bounds = array<i64: 128, 128>}, {pipeline_mode = #tpu.pipeline_mode<synchronous>, transform_indices = @transform_2, window_bounds = array<i64: 1, 128>}, {transform_indices = @transform_3, window_bounds = array<i64: 32, 128>}]} {
    %c0 = arith.constant 0 : index
    %c0_0 = arith.constant 0 : index
    %0 = vector.load %arg1[%c0, %c0_0] : memref<32x128xbf16, #tpu.memory_space<vmem>>, vector<32x128xbf16>
    %c0_1 = arith.constant 0 : index
    %c0_2 = arith.constant 0 : index
    %1 = vector.load %arg2[%c0_1, %c0_2] : memref<128x128xbf16, #tpu.memory_space<vmem>>, vector<128x128xbf16>
    %cst = arith.constant dense<0.000000e+00> : vector<32x128xf32>
    %2 = tpu.matmul %0, %1, %cst {dimension_numbers = #tpu.dot_dimension_numbers<[1], [0], [0], [1], [0, 0, 1, 1], [], []>} : vector<32x128xbf16>, vector<128x128xbf16>, vector<32x128xf32> -> vector<32x128xf32>
    %c0_3 = arith.constant 0 : index
    %c0_4 = arith.constant 0 : index
    %3 = vector.load %arg3[%c0_3, %c0_4] : memref<1x128xf32, #tpu.memory_space<vmem>>, vector<1x128xf32>
    %4 = vector.broadcast %3 : vector<1x128xf32> to vector<32x128xf32>
    %5 = arith.addf %2, %4 : vector<32x128xf32>
    %6 = arith.truncf %5 : vector<32x128xf32> to vector<32x128xbf16>
    %c0_5 = arith.constant 0 : index
    %c0_6 = arith.constant 0 : index
    %7 = vector.load %arg4[%c0_5, %c0_6] : memref<32x128xbf16, #tpu.memory_space<vmem>>, vector<32x128xbf16>
    tpu.vector_store %arg4[%c0_5, %c0_6], %6 {strides = array<i32>} : memref<32x128xbf16, #tpu.memory_space<vmem>>, vector<32x128xbf16>,
    return
  }
  func.func @transform_0(%arg0: i32) -> (i32, i32) {
    %c0_i32 = arith.constant 0 : i32
    %c0_i32_0 = arith.constant 0 : i32
    return %arg0, %c0_i32 : i32, i32
  }
  func.func @transform_1(%arg0: i32) -> (i32, i32) {
    %c0_i32 = arith.constant 0 : i32
    %c0_i32_0 = arith.constant 0 : i32
    %c0_i32_1 = arith.constant 0 : i32
    return %c0_i32, %c0_i32_0 : i32, i32
  }
  func.func @transform_2(%arg0: i32) -> (i32, i32) {
    %c0_i32 = arith.constant 0 : i32
    %c0_i32_0 = arith.constant 0 : i32
    %c0_i32_1 = arith.constant 0 : i32
    return %c0_i32, %c0_i32_0 : i32, i32
  }
  func.func @transform_3(%arg0: i32) -> (i32, i32) {
    %c0_i32 = arith.constant 0 : i32
    %c0_i32_0 = arith.constant 0 : i32
    return %arg0, %c0_i32 : i32, i32
  }
}

</mosaic_0001>

<bundles_post_ra>
// kernel: lin_project_patches.2
= control target key start
LH: loop header
LB: loop body
LE: loop exit
PB: predicated region body
PF: predicated region fallthrough
CT: control target
= control target key end

     0   :  { %s458_s0 = inlined_call_operand.vmem [shape: bf16[128,128], index: 0, kind: input, shape index: {}]   ;;  %s459_s1 = inlined_call_operand.vmem [shape: f32[1,128], index: 1, kind: input, shape index: {}]   ;;  %s460_s2 = inlined_call_operand.vmem [shape: bf16[32,64], index: 2, kind: input, shape index: {}]   ;;  %s461_s3 = inlined_call_operand.<no memory space> [shape: bf16[], index: 3, kind: input, shape index: {}]   ;;  %s462_s4 = inlined_call_operand.hbm [shape: bf16[32,128], index: 4, kind: output, shape index: {}]  }
   0x1   :  { %v9_v0 = vstv %s461_s3 }
   0x2   :  { %v10_v1 = vunpack.i.l.bf16 %v9_v0 }
   0x3   :  { %v347_v2 = vld [vmem:[%s458_s0] sm:$0xff]   ;;  %v33_v3 = vlaneseq  ;;  %v348_v4 = vld [vmem:[%s458_s0 + $0x8] sm:$0xff]   ;;  %v349_v5 = vld [vmem:[%s458_s0 + $0x10] sm:$0xff]  }
   0x4   :  { %323 = vmatprep.subr.bf16.mxu0 %v347_v2  ;;  %v350_v7 = vld [vmem:[%s458_s0 + $0x18] sm:$0xff]   ;;  %v30_v8 = vld [vmem:[%s460_s2] sm:$0xff]   ;;  %v281_v9 = vld [vmem:[%s460_s2 + $0x8] sm:$0xff]  }
   0x5   :  { %324 = vmatpush3.bf16.msra.mxu0 %v347_v2  ;;  %v34_v6 = vand.u32 127, %v33_v3 }
   0x6   :  { %325 = vmatprep.subr.bf16.mxu0 %v348_v4 }
   0x7   :  { %vm36_vm0 = vcmp.lt.s32.totalorder %v34_v6, 64 }
   0x9   :  { %326 = vmatpush3.bf16.msra.mxu0 %v348_v4 }
   0xa   :  { %327 = vmatprep.subr.bf16.mxu0 %v349_v5 }
   0xb   :  { %14 = vsyncpa [#allocation8], 0  ;;  %v31_v10 = vunpack.c.l.bf16 %v30_v8  ;;  %v52_v11 = vunpack.c.h.bf16 %v30_v8  ;;  %v74_v12 = vunpack.c.l.bf16 %v281_v9  ;;  %v96_v13 = vunpack.c.h.bf16 %v281_v9  ;;  %v351_v18 = vld [vmem:[%s458_s0 + $0x20] sm:$0xff]   ;;  %v352_v24 = vld [vmem:[%s458_s0 + $0x28] sm:$0xff]   ;;  %s382_s11 = smov [#allocation7]  }
   0xc   :  { %v381_v19 = vmov 0.0   ;;  %v353_v25 = vld [vmem:[%s458_s0 + $0x30] sm:$0xff]   ;;  %v354_v27 = vld [vmem:[%s458_s0 + $0x38] sm:$0xff]   ;;  %v283_v30 = vld [vmem:[%s459_s1] ss:$0 sm:$0xff]  ;;  %s269_s12 = sshll.u32 %s382_s11, 4  ;;  %s270_s12 = int_to_ptr.vmem [resolvable:$true] %s269_s12 }
   0xd   :  { %328 = vmatpush3.bf16.msra.mxu0 %v349_v5  ;;  %v37_v14 = vsel %vm36_vm0, %v31_v10, %v10_v1  ;;  %v58_v15 = vsel %vm36_vm0, %v52_v11, %v10_v1  ;;  %v80_v16 = vsel %vm36_vm0, %v74_v12, %v10_v1  ;;  %v102_v17 = vsel %vm36_vm0, %v96_v13, %v10_v1  ;;  %s357_s0 = scalar_lea.vmem %s270_s12, 256  ;;  %p362_p1 = scmp.lt.s32.totalorder %s270_s12, %s270_s12 }
   0xe   :  { %329 = vmatprep.subr.bf16.mxu0 %v350_v7  ;;  %v38_v20 = vpack.c.bf16 %v381_v19, %v37_v14  ;;  %v60_v21 = vpack.c.bf16 %v381_v19, %v58_v15  ;;  %v82_v22 = vpack.c.bf16 %v381_v19, %v80_v16  ;;  %v104_v23 = vpack.c.bf16 %v381_v19, %v102_v17  ;;  %p358_p0 = scmp.ne.s32.totalorder %s270_s12, %s357_s0  ;;  %p363_p2 = scmp.lt.s32.totalorder %s357_s0, %s357_s0 }
  0x10   :  { %40 = vst [vmem:[#allocation9] sm:$0xf] %v38_v20  ;;  %62 = vst [vmem:[#allocation9 + $0x4] sm:$0xf] %v60_v21  ;;  %p364_p3 = por %p363_p2, %p362_p1 }
  0x11   :  { %84 = vst [vmem:[#allocation9 + $0x8] sm:$0xf] %v82_v22  ;;  %106 = vst [vmem:[#allocation9 + $0xc] sm:$0xf] %v104_v23  ;;  %330 = vmatpush3.bf16.msra.mxu0 %v350_v7 }
  0x12   :  { %331 = vmatprep.subr.bf16.mxu0 %v351_v18  ;;  %p365_p4 = pnand %p364_p3, %p358_p0 }
  0x15   :  { %332 = vmatpush3.bf16.msra.mxu0 %v351_v18 }
  0x16   :  { %333 = vmatprep.subr.bf16.mxu0 %v352_v24 }
  0x17   :  { %v355_v26 = vld [vmem:[#allocation9] sm:$0xff]  }
  0x18   :  { %339 = vmatprep.mubr.bf16.mxu0 %v355_v26  ;;  %v356_v28 = vld [vmem:[#allocation9 + $0x8] sm:$0xff]  }
  0x19   :  { %334 = vmatpush3.bf16.msra.mxu0 %v352_v24 }
  0x1a   :  { %335 = vmatprep.subr.bf16.mxu0 %v353_v25 }
  0x1d   :  { %336 = vmatpush3.bf16.msra.mxu0 %v353_v25 }
  0x1e   :  { %337 = vmatprep.subr.bf16.mxu0 %v354_v27 }
  0x21   :  { %338 = vmatpush3.bf16.msra.mxu0 %v354_v27 }
  0x24   :  { %340 = vmatmul.mubr.bf16.vlgmr.msra.gmra.mrb[0].mxu0 %v356_v28 }
  0xf7   :  { %v341_v29 = vpop.f32.mrb[0].mxu0 }
  0xf8   :  { %v229_v31 = vpop.f32.mrb[1].mxu0  ;;  %v238_v33 = vadd.f32 %v341_v29, %v283_v30 }
  0xf9   :  { %v342_v32 = vpop.f32.mrb[2].mxu0  ;;  %v230_v36 = vadd.f32 %v283_v30, %v229_v31 }
  0xfa   :  { %v241_v34 = vadd.f32 %v342_v32, %v283_v30  ;;  %v232_v35 = vpop.f32.mrb[3].mxu0 }
  0xfb   :  { %v233_v37 = vadd.f32 %v283_v30, %v232_v35 }
  0xfc   :  { %v310_v38 = vpack.c.bf16 %v241_v34, %v238_v33 }
  0xfd   :  { %v305_v39 = vpack.c.bf16 %v233_v37, %v230_v36 }
  0xfe   :  { %312 = vst [vmem:[#allocation7 + $0x8] sm:$0xff] %v310_v38  }
  0xff   :  { %306 = vst [vmem:[#allocation7] sm:$0xff] %v305_v39  }
 0x100   :  { %368 = shalt.err (!%p365_p4)
}
 0x101   :  { %s369_s14 = scalar_lea.hbm %s462_s4, 256 }
 0x102   :  { %p370_p5 = scmp.ne.s32.totalorder %s462_s4, %s369_s14  ;;  %p373_p6 = scmp.lt.u32.totalorder %s369_s14, %s462_s4 }
 0x104   :  { %p375_p7 = pnand %p373_p6, %p370_p5 }
 0x106   :  { %378 = shalt.err (!%p375_p7)
}
 0x107   :  { %s383_s19 = smov 64   ;;  %s384_s20 = smov 4  }
 0x108   :  { %275 = dma.vmem_to_hbm [thread:$0]  %s270_s12, 256, %s462_s4, [#allocation8], %s383_s19, %s383_s19, %s384_s20  }
 0x109   :  { %379 = dma.done.wait [#allocation8], 256  }
 0x10a   :  { %380 = vsyncadd [#allocation8], 4294967040 }
 0x10b   :  { %279 = vsyncpa [#allocation8], 1 }

</bundles_post_ra>
